<compile_context>
chip_gen: v7x
topology: tpu7x:2x2x1
jax: 0.10.0
libtpu: 0.0.40
codegen_flags: <defaults>
</compile_context>

<pallas_src>
import functools

import jax
import jax.numpy as jnp
import numpy as np
from jax import lax
from jax.experimental import pallas as pl
from jax.experimental.pallas import tpu as pltpu


def _poly_kernel(x_ref, w_ref, b_ref, o_ref, *, cls_taps, Mq_pad, Nb):
    """One grid step: Nb images x all s*s polyphase classes.

    x_ref: (Nb, C2, L)               compute-dtype flattened padded input
    w_ref: (n_taps, Co2, C2)         compute-dtype combined complex weights (class-grouped)
    b_ref: (Co2, 1)                  f32 combined bias
    o_ref: (Nb, n_cls, Co2, Mq_pad)  out-dtype, lane-dense per-class planes
    cls_taps: static tuple, per class, of (weight_index, flat_input_offset)
    """
    Co2 = o_ref.shape[2]
    bias = jnp.broadcast_to(b_ref[...], (Co2, Mq_pad))     # hoisted, one broadcast

    def body(b, carry):
        for ci, taps in enumerate(cls_taps):                # static: s*s classes
            acc = bias
            for wi, off in taps:                            # static: real taps only
                rhs = x_ref[b, :, pl.ds(off, Mq_pad)]       # (C2, Mq_pad) contiguous lanes
                acc = acc + lax.dot_general(
                    w_ref[wi], rhs,
                    dimension_numbers=(((1,), (0,)), ((), ())),
                    preferred_element_type=jnp.float32)
            o_ref[b, ci] = acc.astype(o_ref.dtype)          # one live accumulator at a time
        return carry

    lax.fori_loop(0, Nb, body, 0)


def complex_conv_transpose2d(x, Wr, Wi, br, bi, *, stride=1, padding=0,
                             output_padding=0, dilation=1,
                             compute_dtype=jnp.bfloat16,
                             out_dtype=jnp.bfloat16):
    """x: (N, 2*Cin, H, W). Wr/Wi: (Cin, Cout, kH, kW). br/bi: (Cout,)."""
    N, C2, H, W = x.shape
    Cout = int(Wr.shape[1])
    Co2 = 2 * Cout
    kH, kW = int(Wr.shape[2]), int(Wr.shape[3])
    s, p, op, d = int(stride), int(padding), int(output_padding), int(dilation)
    if op >= s and op >= d:
        raise ValueError("output_padding must be smaller than either stride or dilation")
    Hout = (H - 1) * s - 2 * p + d * (kH - 1) + op + 1
    Wout = (W - 1) * s - 2 * p + d * (kW - 1) + op + 1
    Hq = -(-Hout // s)                       # rows per residue class (uniform, cropped later)
    Wq = -(-Wout // s)
    n_cls = s * s

    # ---- polyphase tap analysis (static Python; each tap (kh,kw) belongs to exactly
    #      one residue class: rh = (kh*d - p) mod s, rw = (kw*d - p) mod s) ------------
    kh_of = [[kh for kh in range(kH) if (kh * d - p) % s == r] for r in range(s)]
    kw_of = [[kw for kw in range(kW) if (kw * d - p) % s == r] for r in range(s)]
    offh = {(r, kh): (r + p - kh * d) // s for r in range(s) for kh in kh_of[r]}
    offw = {(r, kw): (r + p - kw * d) // s for r in range(s) for kw in kw_of[r]}
    all_oh = list(offh.values()) or [0]
    all_ow = list(offw.values()) or [0]
    pt = max(0, -min(all_oh))
    pb = max(0, Hq + max(all_oh) - H)
    plft = max(0, -min(all_ow))
    prgt = max(0, Wq + max(all_ow) - W)
    Win_p = plft + W + prgt
    Mq = Hq * Win_p
    Mq_pad = -(-Mq // 128) * 128             # lane-dense accumulator/output (unmasked stores)

    cls_taps, order = [], []
    max_flat = 0
    for rh in range(s):
        for rw in range(s):
            taps = []
            for kh in kh_of[rh]:
                for kw in kw_of[rw]:
                    flat = (offh[(rh, kh)] + pt) * Win_p + (offw[(rw, kw)] + plft)
                    max_flat = max(max_flat, flat)
                    taps.append((len(order), flat))
                    order.append(kh * kW + kw)
            cls_taps.append(tuple(taps))
    cls_taps = tuple(cls_taps)
    n_taps = len(order)                      # == kH*kW (each tap in exactly one class)

    # flat input length: every tap slice [flat, flat + Mq_pad) must stay in bounds;
    # fold the lane overhang into extra (zero) bottom rows so staging is ONE lax.pad.
    L_needed = max_flat + Mq_pad
    Hin_p = pt + H + pb
    if Hin_p * Win_p < L_needed:
        pb += -(-(L_needed - Hin_p * Win_p) // Win_p)
        Hin_p = pt + H + pb
    L = Hin_p * Win_p

    # ---- weights: complex-combined, (out,in)-ordered, grouped by polyphase class ----
    WrT = jnp.transpose(Wr, (2, 3, 1, 0))    # (kH, kW, Cout, Cin)
    WiT = jnp.transpose(Wi, (2, 3, 1, 0))
    M = jnp.concatenate([jnp.concatenate([WrT, -WiT], axis=3),
                         jnp.concatenate([WiT, WrT], axis=3)], axis=2)   # (kH,kW,Co2,C2)
    W_k = M.reshape(kH * kW, Co2, C2)[jnp.asarray(order, jnp.int32)].astype(compute_dtype)
    b_full = jnp.concatenate([br - bi, br + bi]).reshape(Co2, 1).astype(jnp.float32)

    # ---- input staging: ONE pass (cast + edge pad + flat overhang), no zero-insert ---
    x_flat = lax.pad(x.astype(compute_dtype), jnp.zeros((), compute_dtype),
                     ((0, 0, 0), (0, 0, 0), (pt, pb, 0), (plft, prgt, 0))
                     ).reshape(N, C2, L)

    # ---- batch blocking: generation-aware VMEM budget, keep >= 2 grid steps ----------
    try:
        vmem_cap = int(pltpu.get_tpu_info().vmem_capacity_bytes)
    except Exception:
        vmem_cap = 64 << 20                  # safe fallback for every TPU generation
    in_sz = np.dtype(compute_dtype).itemsize
    out_sz = np.dtype(out_dtype).itemsize
    per_img = C2 * L * in_sz + n_cls * Co2 * Mq_pad * out_sz
    budget = int(vmem_cap * 0.4)
    Nb = 1
    for cand in range(N, 0, -1):
        if N % cand:
            continue
        if N >= 2 and N // cand < 2:         # never collapse the grid: keep both v7x TCs busy
            continue
        if 2 * cand * per_img <= budget:
            Nb = cand
            break
    w_bytes = n_taps * Co2 * C2 * in_sz + Co2 * 4
    vmem_limit = int(min(vmem_cap * 0.85, 2 * Nb * per_img + 2 * w_bytes + (8 << 20)))
    # TODO(synk): for N == 1 or single images larger than the VMEM budget, add a second
    # (spatial) grid axis instead of relying on batch blocking alone.

    kern = functools.partial(_poly_kernel, cls_taps=cls_taps, Mq_pad=Mq_pad, Nb=Nb)
    out_cls = pl.pallas_call(
        kern,
        out_shape=jax.ShapeDtypeStruct((N, n_cls, Co2, Mq_pad), out_dtype),
        grid_spec=pltpu.PrefetchScalarGridSpec(
            num_scalar_prefetch=0,
            grid=(N // Nb,),
            in_specs=[
                pl.BlockSpec((Nb, C2, L), lambda i: (i, 0, 0)),
                pl.BlockSpec((n_taps, Co2, C2), lambda i: (0, 0, 0)),
                pl.BlockSpec((Co2, 1), lambda i: (0, 0)),
            ],
            out_specs=pl.BlockSpec((Nb, n_cls, Co2, Mq_pad), lambda i: (i, 0, 0, 0)),
        ),
        compiler_params=pltpu.CompilerParams(
            dimension_semantics=("parallel",),
            vmem_limit_bytes=vmem_limit,
        ),
    )(x_flat, W_k, b_full)

    # ---- interleave the s*s class planes back into (N, Co2, Hout, Wout) --------------
    out = out_cls[..., :Mq].reshape(N, s, s, Co2, Hq, Win_p)[..., :Wq]
    out = jnp.transpose(out, (0, 3, 4, 1, 5, 2)).reshape(N, Co2, Hq * s, Wq * s)
    return out[:, :, :Hout, :Wout]


if __name__ == "__main__":
    # Module config (typical decoder upsampling layer)
    in_channels, out_channels = 4, 4
    kH = kW = 3
    stride, padding, output_padding, dilation = 2, 1, 1, 1
    N, H, W = 2, 16, 16

    key = jax.random.PRNGKey(0)
    k1, k2, k3, k4, k5 = jax.random.split(key, 5)
    fan = in_channels * kH * kW
    bound = 1.0 / np.sqrt(fan)
    Wr = jax.random.uniform(k1, (in_channels, out_channels, kH, kW), jnp.float32, -bound, bound)
    Wi = jax.random.uniform(k2, (in_channels, out_channels, kH, kW), jnp.float32, -bound, bound)
    br = jax.random.uniform(k3, (out_channels,), jnp.float32, -bound, bound)
    bi = jax.random.uniform(k4, (out_channels,), jnp.float32, -bound, bound)
    x = jax.random.normal(k5, (N, 2 * in_channels, H, W), jnp.float32)

    fwd = jax.jit(functools.partial(
        complex_conv_transpose2d, stride=stride, padding=padding,
        output_padding=output_padding, dilation=dilation))
    out = jax.block_until_ready(fwd(x, Wr, Wi, br, bi))

    # Pure-JAX reference: same bf16 operand rounding, f32 accumulation.
    def conv_t_ref(xh, Wt, b):
        y = lax.conv_general_dilated(
            xh.astype(jnp.bfloat16),
            jnp.flip(Wt, (2, 3)).transpose(1, 0, 2, 3).astype(jnp.bfloat16),  # (Cout,Cin,kH,kW)
            window_strides=(1, 1),
            padding=((dilation * (kH - 1) - padding,
                      dilation * (kH - 1) - padding + output_padding),
                     (dilation * (kW - 1) - padding,
                      dilation * (kW - 1) - padding + output_padding)),
            lhs_dilation=(stride, stride),
            rhs_dilation=(dilation, dilation),
            dimension_numbers=("NCHW", "OIHW", "NCHW"),
            preferred_element_type=jnp.float32)
        return y + b[None, :, None, None]

    xr, xi = jnp.split(x, 2, axis=1)
    ref_real = conv_t_ref(xr, Wr, br) - conv_t_ref(xi, Wi, bi)
    ref_imag = conv_t_ref(xi, Wr, br) + conv_t_ref(xr, Wi, bi)
    ref = jnp.concatenate([ref_real, ref_imag], axis=1)

    Hout = (H - 1) * stride - 2 * padding + dilation * (kH - 1) + output_padding + 1
    Wout = (W - 1) * stride - 2 * padding + dilation * (kW - 1) + output_padding + 1
    assert out.shape == (N, 2 * out_channels, Hout, Wout), out.shape
    np.testing.assert_allclose(np.asarray(out.astype(jnp.float32)), np.asarray(ref),
                               atol=2e-2, rtol=2e-2)
    print("KERNEL_OK")
</pallas_src>

<mosaic_0001>
module attributes {stable_mosaic.version = 11 : i64} {
  func.func @_poly_kernel(%arg0: i32, %arg1: memref<1x8x408xbf16, #tpu.memory_space<vmem>>, %arg2: memref<9x8x8xbf16, #tpu.memory_space<vmem>>, %arg3: memref<8x1xf32, #tpu.memory_space<vmem>>, %arg4: memref<1x4x8x384xbf16, #tpu.memory_space<vmem>>) attributes {dimension_semantics = [#tpu.dimension_semantics<parallel>], iteration_bounds = array<i64: 2>, scalar_prefetch = 0 : i64, scratch_operands = 0 : i64, tpu.core_type = #tpu.core_type<tc>, window_params = [{transform_indices = @transform_0, window_bounds = array<i64: 1, 8, 408>}, {pipeline_mode = #tpu.pipeline_mode<synchronous>, transform_indices = @transform_1, window_bounds = array<i64: 9, 8, 8>}, {pipeline_mode = #tpu.pipeline_mode<synchronous>, transform_indices = @transform_2, window_bounds = array<i64: 8, 1>}, {transform_indices = @transform_3, window_bounds = array<i64: 1, 4, 8, 384>}]} {
    %c0 = arith.constant 0 : index
    %c0_0 = arith.constant 0 : index
    %0 = vector.load %arg3[%c0, %c0_0] : memref<8x1xf32, #tpu.memory_space<vmem>>, vector<8x1xf32>
    %1 = vector.shape_cast %0 : vector<8x1xf32> to vector<8x1xf32>
    %2 = vector.broadcast %1 : vector<8x1xf32> to vector<8x384xf32>
    %c0_i32 = arith.constant 0 : i32
    %3 = arith.index_cast %c0_i32 : i32 to index
    %c0_1 = arith.constant 0 : index
    %c0_2 = arith.constant 0 : index
    %4 = vector.load %arg1[%3, %c0_1, %c0_2] : memref<1x8x408xbf16, #tpu.memory_space<vmem>>, vector<1x8x384xbf16>
    %5 = vector.shape_cast %4 : vector<1x8x384xbf16> to vector<8x384xbf16>
    %c0_3 = arith.constant 0 : index
    %c0_4 = arith.constant 0 : index
    %c0_5 = arith.constant 0 : index
    %6 = vector.load %arg2[%c0_3, %c0_4, %c0_5] : memref<9x8x8xbf16, #tpu.memory_space<vmem>>, vector<1x8x8xbf16>
    %7 = vector.shape_cast %6 : vector<1x8x8xbf16> to vector<8x8xbf16>
    %cst = arith.constant dense<0.000000e+00> : vector<8x384xf32>
    %8 = tpu.matmul %7, %5, %cst {dimension_numbers = #tpu.dot_dimension_numbers<[1], [0], [0], [1], [0, 0, 1, 1], [], []>} : vector<8x8xbf16>, vector<8x384xbf16>, vector<8x384xf32> -> vector<8x384xf32>
    %9 = arith.addf %2, %8 : vector<8x384xf32>
    %10 = arith.truncf %9 : vector<8x384xf32> to vector<8x384xbf16>
    %11 = arith.index_cast %c0_i32 : i32 to index
    %c0_6 = arith.constant 0 : index
    %c0_7 = arith.constant 0 : index
    %c0_8 = arith.constant 0 : index
    %12 = vector.load %arg4[%11, %c0_6, %c0_7, %c0_8] : memref<1x4x8x384xbf16, #tpu.memory_space<vmem>>, vector<1x1x8x384xbf16>
    %13 = vector.shape_cast %12 : vector<1x1x8x384xbf16> to vector<8x384xbf16>
    %14 = vector.shape_cast %10 : vector<8x384xbf16> to vector<1x1x8x384xbf16>
    tpu.vector_store %arg4[%11, %c0_6, %c0_7, %c0_8], %14 {strides = array<i32>} : memref<1x4x8x384xbf16, #tpu.memory_space<vmem>>, vector<1x1x8x384xbf16>,
    %15 = arith.index_cast %c0_i32 : i32 to index
    %c0_9 = arith.constant 0 : index
    %c1 = arith.constant 1 : index
    %16 = vector.load %arg1[%15, %c0_9, %c1] : memref<1x8x408xbf16, #tpu.memory_space<vmem>>, vector<1x8x384xbf16>
    %17 = vector.shape_cast %16 : vector<1x8x384xbf16> to vector<8x384xbf16>
    %c1_10 = arith.constant 1 : index
    %c0_11 = arith.constant 0 : index
    %c0_12 = arith.constant 0 : index
    %18 = vector.load %arg2[%c1_10, %c0_11, %c0_12] : memref<9x8x8xbf16, #tpu.memory_space<vmem>>, vector<1x8x8xbf16>
    %19 = vector.shape_cast %18 : vector<1x8x8xbf16> to vector<8x8xbf16>
    %cst_13 = arith.constant dense<0.000000e+00> : vector<8x384xf32>
    %20 = tpu.matmul %19, %17, %cst_13 {dimension_numbers = #tpu.dot_dimension_numbers<[1], [0], [0], [1], [0, 0, 1, 1], [], []>} : vector<8x8xbf16>, vector<8x384xbf16>, vector<8x384xf32> -> vector<8x384xf32>
    %21 = arith.addf %2, %20 : vector<8x384xf32>
    %22 = arith.index_cast %c0_i32 : i32 to index
    %c0_14 = arith.constant 0 : index
    %c0_15 = arith.constant 0 : index
    %23 = vector.load %arg1[%22, %c0_14, %c0_15] : memref<1x8x408xbf16, #tpu.memory_space<vmem>>, vector<1x8x384xbf16>
    %24 = vector.shape_cast %23 : vector<1x8x384xbf16> to vector<8x384xbf16>
    %c2 = arith.constant 2 : index
    %c0_16 = arith.constant 0 : index
    %c0_17 = arith.constant 0 : index
    %25 = vector.load %arg2[%c2, %c0_16, %c0_17] : memref<9x8x8xbf16, #tpu.memory_space<vmem>>, vector<1x8x8xbf16>
    %26 = vector.shape_cast %25 : vector<1x8x8xbf16> to vector<8x8xbf16>
    %cst_18 = arith.constant dense<0.000000e+00> : vector<8x384xf32>
    %27 = tpu.matmul %26, %24, %cst_18 {dimension_numbers = #tpu.dot_dimension_numbers<[1], [0], [0], [1], [0, 0, 1, 1], [], []>} : vector<8x8xbf16>, vector<8x384xbf16>, vector<8x384xf32> -> vector<8x384xf32>
    %28 = arith.addf %21, %27 : vector<8x384xf32>
    %29 = arith.truncf %28 : vector<8x384xf32> to vector<8x384xbf16>
    %30 = arith.index_cast %c0_i32 : i32 to index
    %c1_19 = arith.constant 1 : index
    %c0_20 = arith.constant 0 : index
    %c0_21 = arith.constant 0 : index
    %31 = vector.load %arg4[%30, %c1_19, %c0_20, %c0_21] : memref<1x4x8x384xbf16, #tpu.memory_space<vmem>>, vector<1x1x8x384xbf16>
    %32 = vector.shape_cast %31 : vector<1x1x8x384xbf16> to vector<8x384xbf16>
    %33 = vector.shape_cast %29 : vector<8x384xbf16> to vector<1x1x8x384xbf16>
    tpu.vector_store %arg4[%30, %c1_19, %c0_20, %c0_21], %33 {strides = array<i32>} : memref<1x4x8x384xbf16, #tpu.memory_space<vmem>>, vector<1x1x8x384xbf16>,
    %34 = arith.index_cast %c0_i32 : i32 to index
    %c0_22 = arith.constant 0 : index
    %c17 = arith.constant 17 : index
    %35 = vector.load %arg1[%34, %c0_22, %c17] : memref<1x8x408xbf16, #tpu.memory_space<vmem>>, vector<1x8x384xbf16>
    %36 = vector.shape_cast %35 : vector<1x8x384xbf16> to vector<8x384xbf16>
    %c3 = arith.constant 3 : index
    %c0_23 = arith.constant 0 : index
    %c0_24 = arith.constant 0 : index
    %37 = vector.load %arg2[%c3, %c0_23, %c0_24] : memref<9x8x8xbf16, #tpu.memory_space<vmem>>, vector<1x8x8xbf16>
    %38 = vector.shape_cast %37 : vector<1x8x8xbf16> to vector<8x8xbf16>
    %cst_25 = arith.constant dense<0.000000e+00> : vector<8x384xf32>
    %39 = tpu.matmul %38, %36, %cst_25 {dimension_numbers = #tpu.dot_dimension_numbers<[1], [0], [0], [1], [0, 0, 1, 1], [], []>} : vector<8x8xbf16>, vector<8x384xbf16>, vector<8x384xf32> -> vector<8x384xf32>
    %40 = arith.addf %2, %39 : vector<8x384xf32>
    %41 = arith.index_cast %c0_i32 : i32 to index
    %c0_26 = arith.constant 0 : index
    %c0_27 = arith.constant 0 : index
    %42 = vector.load %arg1[%41, %c0_26, %c0_27] : memref<1x8x408xbf16, #tpu.memory_space<vmem>>, vector<1x8x384xbf16>
    %43 = vector.shape_cast %42 : vector<1x8x384xbf16> to vector<8x384xbf16>
    %c4 = arith.constant 4 : index
    %c0_28 = arith.constant 0 : index
    %c0_29 = arith.constant 0 : index
    %44 = vector.load %arg2[%c4, %c0_28, %c0_29] : memref<9x8x8xbf16, #tpu.memory_space<vmem>>, vector<1x8x8xbf16>
    %45 = vector.shape_cast %44 : vector<1x8x8xbf16> to vector<8x8xbf16>
    %cst_30 = arith.constant dense<0.000000e+00> : vector<8x384xf32>
    %46 = tpu.matmul %45, %43, %cst_30 {dimension_numbers = #tpu.dot_dimension_numbers<[1], [0], [0], [1], [0, 0, 1, 1], [], []>} : vector<8x8xbf16>, vector<8x384xbf16>, vector<8x384xf32> -> vector<8x384xf32>
    %47 = arith.addf %40, %46 : vector<8x384xf32>
    %48 = arith.truncf %47 : vector<8x384xf32> to vector<8x384xbf16>
    %49 = arith.index_cast %c0_i32 : i32 to index
    %c2_31 = arith.constant 2 : index
    %c0_32 = arith.constant 0 : index
    %c0_33 = arith.constant 0 : index
    %50 = vector.load %arg4[%49, %c2_31, %c0_32, %c0_33] : memref<1x4x8x384xbf16, #tpu.memory_space<vmem>>, vector<1x1x8x384xbf16>
    %51 = vector.shape_cast %50 : vector<1x1x8x384xbf16> to vector<8x384xbf16>
    %52 = vector.shape_cast %48 : vector<8x384xbf16> to vector<1x1x8x384xbf16>
    tpu.vector_store %arg4[%49, %c2_31, %c0_32, %c0_33], %52 {strides = array<i32>} : memref<1x4x8x384xbf16, #tpu.memory_space<vmem>>, vector<1x1x8x384xbf16>,
    %53 = arith.index_cast %c0_i32 : i32 to index
    %c0_34 = arith.constant 0 : index
    %c18 = arith.constant 18 : index
    %54 = vector.load %arg1[%53, %c0_34, %c18] : memref<1x8x408xbf16, #tpu.memory_space<vmem>>, vector<1x8x384xbf16>
    %55 = vector.shape_cast %54 : vector<1x8x384xbf16> to vector<8x384xbf16>
    %c5 = arith.constant 5 : index
    %c0_35 = arith.constant 0 : index
    %c0_36 = arith.constant 0 : index
    %56 = vector.load %arg2[%c5, %c0_35, %c0_36] : memref<9x8x8xbf16, #tpu.memory_space<vmem>>, vector<1x8x8xbf16>
    %57 = vector.shape_cast %56 : vector<1x8x8xbf16> to vector<8x8xbf16>
    %cst_37 = arith.constant dense<0.000000e+00> : vector<8x384xf32>
    %58 = tpu.matmul %57, %55, %cst_37 {dimension_numbers = #tpu.dot_dimension_numbers<[1], [0], [0], [1], [0, 0, 1, 1], [], []>} : vector<8x8xbf16>, vector<8x384xbf16>, vector<8x384xf32> -> vector<8x384xf32>
    %59 = arith.addf %2, %58 : vector<8x384xf32>
    %60 = arith.index_cast %c0_i32 : i32 to index
    %c0_38 = arith.constant 0 : index
    %c17_39 = arith.constant 17 : index
    %61 = vector.load %arg1[%60, %c0_38, %c17_39] : memref<1x8x408xbf16, #tpu.memory_space<vmem>>, vector<1x8x384xbf16>
    %62 = vector.shape_cast %61 : vector<1x8x384xbf16> to vector<8x384xbf16>
    %c6 = arith.constant 6 : index
    %c0_40 = arith.constant 0 : index
    %c0_41 = arith.constant 0 : index
    %63 = vector.load %arg2[%c6, %c0_40, %c0_41] : memref<9x8x8xbf16, #tpu.memory_space<vmem>>, vector<1x8x8xbf16>
    %64 = vector.shape_cast %63 : vector<1x8x8xbf16> to vector<8x8xbf16>
    %cst_42 = arith.constant dense<0.000000e+00> : vector<8x384xf32>
    %65 = tpu.matmul %64, %62, %cst_42 {dimension_numbers = #tpu.dot_dimension_numbers<[1], [0], [0], [1], [0, 0, 1, 1], [], []>} : vector<8x8xbf16>, vector<8x384xbf16>, vector<8x384xf32> -> vector<8x384xf32>
    %66 = arith.addf %59, %65 : vector<8x384xf32>
    %67 = arith.index_cast %c0_i32 : i32 to index
    %c0_43 = arith.constant 0 : index
    %c1_44 = arith.constant 1 : index
    %68 = vector.load %arg1[%67, %c0_43, %c1_44] : memref<1x8x408xbf16, #tpu.memory_space<vmem>>, vector<1x8x384xbf16>
    %69 = vector.shape_cast %68 : vector<1x8x384xbf16> to vector<8x384xbf16>
    %c7 = arith.constant 7 : index
    %c0_45 = arith.constant 0 : index
    %c0_46 = arith.constant 0 : index
    %70 = vector.load %arg2[%c7, %c0_45, %c0_46] : memref<9x8x8xbf16, #tpu.memory_space<vmem>>, vector<1x8x8xbf16>
    %71 = vector.shape_cast %70 : vector<1x8x8xbf16> to vector<8x8xbf16>
    %cst_47 = arith.constant dense<0.000000e+00> : vector<8x384xf32>
    %72 = tpu.matmul %71, %69, %cst_47 {dimension_numbers = #tpu.dot_dimension_numbers<[1], [0], [0], [1], [0, 0, 1, 1], [], []>} : vector<8x8xbf16>, vector<8x384xbf16>, vector<8x384xf32> -> vector<8x384xf32>
    %73 = arith.addf %66, %72 : vector<8x384xf32>
    %74 = arith.index_cast %c0_i32 : i32 to index
    %c0_48 = arith.constant 0 : index
    %c0_49 = arith.constant 0 : index
    %75 = vector.load %arg1[%74, %c0_48, %c0_49] : memref<1x8x408xbf16, #tpu.memory_space<vmem>>, vector<1x8x384xbf16>
    %76 = vector.shape_cast %75 : vector<1x8x384xbf16> to vector<8x384xbf16>
    %c8 = arith.constant 8 : index
    %c0_50 = arith.constant 0 : index
    %c0_51 = arith.constant 0 : index
    %77 = vector.load %arg2[%c8, %c0_50, %c0_51] : memref<9x8x8xbf16, #tpu.memory_space<vmem>>, vector<1x8x8xbf16>
    %78 = vector.shape_cast %77 : vector<1x8x8xbf16> to vector<8x8xbf16>
    %cst_52 = arith.constant dense<0.000000e+00> : vector<8x384xf32>
    %79 = tpu.matmul %78, %76, %cst_52 {dimension_numbers = #tpu.dot_dimension_numbers<[1], [0], [0], [1], [0, 0, 1, 1], [], []>} : vector<8x8xbf16>, vector<8x384xbf16>, vector<8x384xf32> -> vector<8x384xf32>
    %80 = arith.addf %73, %79 : vector<8x384xf32>
    %81 = arith.truncf %80 : vector<8x384xf32> to vector<8x384xbf16>
    %82 = arith.index_cast %c0_i32 : i32 to index
    %c3_53 = arith.constant 3 : index
    %c0_54 = arith.constant 0 : index
    %c0_55 = arith.constant 0 : index
    %83 = vector.load %arg4[%82, %c3_53, %c0_54, %c0_55] : memref<1x4x8x384xbf16, #tpu.memory_space<vmem>>, vector<1x1x8x384xbf16>
    %84 = vector.shape_cast %83 : vector<1x1x8x384xbf16> to vector<8x384xbf16>
    %85 = vector.shape_cast %81 : vector<8x384xbf16> to vector<1x1x8x384xbf16>
    tpu.vector_store %arg4[%82, %c3_53, %c0_54, %c0_55], %85 {strides = array<i32>} : memref<1x4x8x384xbf16, #tpu.memory_space<vmem>>, vector<1x1x8x384xbf16>,
    %c1_i32 = arith.constant 1 : i32
    return
  }
  func.func @transform_0(%arg0: i32) -> (i32, i32, i32) {
    %c0_i32 = arith.constant 0 : i32
    %c0_i32_0 = arith.constant 0 : i32
    %c0_i32_1 = arith.constant 0 : i32
    return %arg0, %c0_i32, %c0_i32_0 : i32, i32, i32
  }
  func.func @transform_1(%arg0: i32) -> (i32, i32, i32) {
    %c0_i32 = arith.constant 0 : i32
    %c0_i32_0 = arith.constant 0 : i32
    %c0_i32_1 = arith.constant 0 : i32
    %c0_i32_2 = arith.constant 0 : i32
    return %c0_i32, %c0_i32_0, %c0_i32_1 : i32, i32, i32
  }
  func.func @transform_2(%arg0: i32) -> (i32, i32) {
    %c0_i32 = arith.constant 0 : i32
    %c0_i32_0 = arith.constant 0 : i32
    %c0_i32_1 = arith.constant 0 : i32
    return %c0_i32, %c0_i32_0 : i32, i32
  }
  func.func @transform_3(%arg0: i32) -> (i32, i32, i32, i32) {
    %c0_i32 = arith.constant 0 : i32
    %c0_i32_0 = arith.constant 0 : i32
    %c0_i32_1 = arith.constant 0 : i32
    %c0_i32_2 = arith.constant 0 : i32
    return %arg0, %c0_i32, %c0_i32_0, %c0_i32_1 : i32, i32, i32, i32
  }
}

</mosaic_0001>

<bundles_post_ra>
// kernel: complex_conv_transpose2d.1
= control target key start
LH: loop header
LB: loop body
LE: loop exit
PB: predicated region body
PF: predicated region fallthrough
CT: control target
= control target key end

     0   :  { %s1584_s12 = smov 0   ;;  %s1772_s0 = inlined_call_operand.vmem [shape: bf16[2,8,408], index: 0, kind: input, shape index: {}]   ;;  %s1773_s1 = inlined_call_operand.vmem [shape: bf16[9,8,8], index: 1, kind: input, shape index: {}]   ;;  %s1774_s2 = inlined_call_operand.vmem [shape: f32[8,1], index: 2, kind: input, shape index: {}]   ;;  %s1775_s3 = inlined_call_operand.vmem [shape: bf16[2,4,8,384], index: 3, kind: output, shape index: {}]  }
   0x1 LB: > { %s1313_s13 = sadd.s32 4294967295, %s1556_s12   ;;  %p1317_p0 = scmp.ge.s32.totalorder %s1556_s12, 1  ;;  %s1556_s12 = sphi %s1584_s12, %s13_s12  }
   0x2   : > { %p137_p1 = scmp.lt.s32.totalorder %s1556_s12, 3 }
   0x4   : > { %p138_p2 = pnand %p1317_p0, %p137_p1 }
   0x5   : > { %p161_p3 = scmp.lt.s32.totalorder (!%p138_p2), %s1313_s13, 1  ;;  %v1558_v0 = vmov (!%p138_p2), 0.0   ;;  %v1559_v1 = vmov (!%p138_p2), 0   ;;  %vm1560_vm0 = vmmov (!%p138_p2), 0   ;;  %vm193_vm1 = vcmask (!%p138_p2), 1043456   ;;  %s1561_s18 = smov (!%p138_p2), 127  }
   0x6   : > { %141 = sbr.rel (%p138_p2) target bundleno = 437 (0x1b5), region = 32  ;;  %1423 = vmatprep.subr.bf16.mxu1 (!%p138_p2), %v1558_v0  ;;  %235 = vmatprep.mubr.bf16.mxu0 (!%p138_p2), %v1559_v1  ;;  %v180_v11 = vld [vmem:[%s1773_s1] sm:$0xf] (!%p138_p2)  ;;  %vm189_vm2 = vcmask (!%p138_p2), 64512   ;;  %s1562_s21 = smov (!%p138_p2), 111   ;;  %vm324_vm3 = vcmask (!%p138_p2), 1039360  }
   0x7   : > { %1425 = vmatprep.mubr.msk.bf16.mxu1 (!%p138_p2), %vm1560_vm0, %v1558_v0  ;;  %1541 = vset.pattern.permute.xlu0 (!%p138_p2), %v1559_v1  ;;  %s1563_s22 = smov (!%p138_p2), 110   ;;  %v172_v12 = vld [vmem:[%s1774_s2] sm:$0xff] (!%p138_p2)  ;;  %vm570_vm4 = vcmask (!%p138_p2), 908288   ;;  %v1337_v32 = vld [vmem:[%s1773_s1 + $0x8] sm:$0xf] (!%p138_p2)  ;;  %vm816_vm5 = vcmask (!%p138_p2), 900096  }
   0x8   : > { %v1329_v23 = vld [vmem:[%s1773_s1 + $0x4] sm:$0xf] (!%p138_p2)  ;;  %v1348_v38 = vld [vmem:[%s1773_s1 + $0xc] sm:$0xf] (!%p138_p2)  ;;  %v1356_v48 = vld [vmem:[%s1773_s1 + $0x10] sm:$0xf] (!%p138_p2) }
   0x9   : > { %v1367_v56 = vld [vmem:[%s1773_s1 + $0x14] sm:$0xf] (!%p138_p2) }
   0xd   : > { %s1777_s13 = smov (!%p161_p3, %s1313_s13), 1 }
   0xe   : > { %s1396_s14 = sshll.u32 %s1777_s13, 4  ;;  %s1526_s16 = smul.u32 48, %s1777_s13 }
   0xf   : > { %s1603_s17 = scalar_lea.vmem %s1772_s0, %s1396_s14 }
  0x10   : > { %v303_v2 = vld [vmem:[%s1603_s17 + $0x8] sm:$0xff]  ;;  %v302_v3 = vld [vmem:[%s1603_s17] sm:$0xff]  ;;  %s1759_s19 = scalar_lea.vmem %s1775_s3, %s1526_s16 }
  0x11   : > { %v1332_v4 = vcombine.low %v303_v2, %v303_v2  ;;  %v1330_v5 = vcombine.low %v302_v3, %v302_v3  ;;  %v1546_v6 = vld [vmem:[%s1603_s17 + $0x8] ss:$0 sps:$4 sm:$0xff]   ;;  %v1608_v7 = vcombine.high %v302_v3, %v302_v3  ;;  %v1333_v8 = vcombine.high %v303_v2, %v303_v2  ;;  %v1375_v3 = vld [vmem:[%s1773_s1 + $0x18] sm:$0xf] }
  0x12   : > { %v201_v10 = vsel %vm193_vm1, %v1546_v6, 0  ;;  %v1547_v17 = vld [vmem:[%s1603_s17 + $0x8] ss:$0 sps:$4 sm:$0xff]  }
  0x13   : > { %320 = vrot.lane.b32.xlu1 %v1332_v4, %s1561_s18  ;;  %316 = vrot.lane.b32.xlu0 %v1330_v5, %s1561_s18  ;;  %v1613_v9 = vsel %vm193_vm1, %v1330_v5, 0  ;;  %v446_v25 = vsel %vm193_vm1, %v1547_v17, 0  ;;  %v1548_v36 = vld [vmem:[%s1603_s17 + $0x8] ss:$0 sps:$4 sm:$0xff]  }
  0x14   : > { %1324 = vmatprep.subr.msk.bf16.mxu0 %vm193_vm1, %v1608_v7  ;;  %1424 = vmatpush3.bf16.msra.mxu1 %v201_v10  ;;  %v692_v40 = vsel %vm193_vm1, %v1548_v36, 0  ;;  %v1549_v6 = vld [vmem:[%s1603_s17 + $0x8] ss:$0 sps:$4 sm:$0xff]  }
  0x15   : > { %204 = vmatpush1.bf16.msra.mxu0 %v1613_v9  ;;  %1429 = vmatprep.subr.bf16.mxu1 %v1558_v0  ;;  %v1156_v10 = vsel %vm193_vm1, %v1549_v6, 0 }
  0x17   : > { %322 = vrot.lane.b32.xlu1 %v1333_v8, %s1561_s18  ;;  %318 = vrot.lane.b32.xlu0 %v1608_v7, %s1561_s18 }
  0x18   : > { %1325 = vmatmul.mubr.msk.bf16.vlgmr.msra.gmra.mrb[0].mxu0 %vm189_vm2, %v180_v11  ;;  %1426 = vmatmul.mubr.msk.bf16.vlgmr.msra.gmra.mrb[0].mxu1 %vm189_vm2, %v180_v11 }
  0x19   : > { %372 = vmatprep.mubr.bf16.mxu0 %v1559_v1  ;;  %1431 = vmatprep.mubr.msk.bf16.mxu1 %vm1560_vm0, %v1558_v0 }
  0x1b   : > { %562 = vrot.lane.b32.xlu0 %v1330_v5, %s1562_s21  ;;  %564 = vrot.lane.b32.xlu1 %v1608_v7, %s1562_s21 }
  0x1f   : > { %566 = vrot.lane.b32.xlu0 %v1332_v4, %s1562_s21  ;;  %568 = vrot.lane.b32.xlu1 %v1333_v8, %s1562_s21 }
  0x23   : > { %808 = vrot.lane.b32.xlu0 %v1330_v5, %s1563_s22  ;;  %810 = vrot.lane.b32.xlu1 %v1608_v7, %s1563_s22 }
  0x27   : > { %812 = vrot.lane.b32.xlu0 %v1332_v4, %s1563_s22  ;;  %814 = vrot.lane.b32.xlu1 %v1333_v8, %s1563_s22 }
  0x2b   : > { %918 = vrot.lane.b32.xlu0 %v1330_v5, %s1562_s21  ;;  %920 = vrot.lane.b32.xlu1 %v1608_v7, %s1562_s21 }
  0x2f   : > { %922 = vrot.lane.b32.xlu0 %v1332_v4, %s1562_s21  ;;  %924 = vrot.lane.b32.xlu1 %v1333_v8, %s1562_s21 }
  0x33   : > { %1027 = vrot.lane.b32.xlu0 %v1330_v5, %s1561_s18  ;;  %1029 = vrot.lane.b32.xlu1 %v1608_v7, %s1561_s18 }
  0x37   : > { %1031 = vrot.lane.b32.xlu0 %v1332_v4, %s1561_s18  ;;  %1033 = vrot.lane.b32.xlu1 %v1333_v8, %s1561_s18  ;;  %v1379_v8 = vld [vmem:[%s1773_s1 + $0x1c] sm:$0xf] }
  0x3b   : > { %175 = vperm.xlu0 %1541, %v172_v12  }
  0x85   : > { %v321_v13 = vpop.permute.xlu1 %320  ;;  %v317_v14 = vpop.permute.xlu0 %316 }
  0x89   : > { %v323_v15 = vpop.permute.xlu1 %322  ;;  %v319_v16 = vpop.permute.xlu0 %318 }
  0x8a   : > { %v327_v18 = vsel %vm324_vm3, %v321_v13, %v323_v15  ;;  %v325_v19 = vsel %vm324_vm3, %v317_v14, %v319_v16  ;;  %v326_v20 = vsel %vm324_vm3, %v319_v16, %v321_v13 }
  0x8b   : > { %v338_v21 = vsel %vm193_vm1, %v327_v18, 0  ;;  %v332_v22 = vsel %vm193_vm1, %v325_v19, 0  ;;  %1334 = vmatprep.subr.msk.bf16.mxu0 %vm193_vm1, %v326_v20 }
  0x8c   : > { %341 = vmatpush1.bf16.msra.mxu0 %v332_v22  ;;  %1430 = vmatpush3.bf16.msra.mxu1 %v338_v21 }
  0x8d   : > { %1341 = vmatprep.subr.msk.bf16.mxu0 %vm193_vm1, %v1608_v7  ;;  %1435 = vmatprep.subr.bf16.mxu1 %v1558_v0  ;;  %v563_v24 = vpop.permute.xlu0 %562  ;;  %v565_v26 = vpop.permute.xlu1 %564 }
  0x8e   : > { %v571_v30 = vsel %vm570_vm4, %v563_v24, %v565_v26 }
  0x8f   : > { %1335 = vmatmul.mubr.msk.bf16.vlgmr.msra.gmra.mrb[4].mxu0 %vm189_vm2, %v1329_v23  ;;  %1432 = vmatmul.mubr.msk.bf16.vlgmr.msra.gmra.mrb[4].mxu1 %vm189_vm2, %v1329_v23  ;;  %v578_v33 = vsel %vm193_vm1, %v571_v30, 0 }
  0x90   : > { %449 = vmatpush1.bf16.msra.mxu0 %v1613_v9  ;;  %1436 = vmatpush3.bf16.msra.mxu1 %v446_v25 }
  0x91   : > { %v567_v27 = vpop.permute.xlu0 %566  ;;  %480 = vmatprep.mubr.bf16.mxu0 %v1559_v1  ;;  %1437 = vmatprep.mubr.msk.bf16.mxu1 %vm1560_vm0, %v1558_v0  ;;  %v569_v29 = vpop.permute.xlu1 %568 }
  0x92   : > { %v572_v28 = vsel %vm570_vm4, %v565_v26, %v567_v27  ;;  %1441 = vmatprep.subr.bf16.mxu1 %v1558_v0  ;;  %v573_v31 = vsel %vm570_vm4, %v567_v27, %v569_v29 }
  0x93   : > { %1353 = vmatprep.subr.msk.bf16.mxu0 %vm193_vm1, %v572_v28  ;;  %v584_v34 = vsel %vm193_vm1, %v573_v31, 0 }
  0x95   : > { %v809_v35 = vpop.permute.xlu0 %808  ;;  %v811_v37 = vpop.permute.xlu1 %810 }
  0x96   : > { %v817_v45 = vsel %vm816_vm5, %v809_v35, %v811_v37 }
  0x97   : > { %v824_v49 = vsel %vm193_vm1, %v817_v45, 0 }
  0x99   : > { %v813_v39 = vpop.permute.xlu0 %812  ;;  %v815_v43 = vpop.permute.xlu1 %814 }
  0x9a   : > { %v818_v41 = vsel %vm816_vm5, %v811_v37, %v813_v39  ;;  %v819_v46 = vsel %vm816_vm5, %v813_v39, %v815_v43 }
  0x9b   : > { %1342 = vmatmul.mubr.msk.bf16.vlgmr.msra.gmra.mrb[4].mxu0 %vm189_vm2, %v1337_v32  ;;  %1438 = vmatmul.mubr.msk.bf16.vlgmr.msra.gmra.mrb[4].mxu1 %vm189_vm2, %v1337_v32  ;;  %v830_v50 = vsel %vm193_vm1, %v819_v46, 0 }
  0x9c   : > { %587 = vmatpush1.bf16.msra.mxu0 %v578_v33  ;;  %1442 = vmatpush3.bf16.msra.mxu1 %v584_v34 }
  0x9d   : > { %618 = vmatprep.mubr.bf16.mxu0 %v1559_v1  ;;  %1443 = vmatprep.mubr.msk.bf16.mxu1 %vm1560_vm0, %v1558_v0  ;;  %v919_v42 = vpop.permute.xlu0 %918  ;;  %v921_v44 = vpop.permute.xlu1 %920 }
  0x9e   : > { %1360 = vmatprep.subr.msk.bf16.mxu0 %vm193_vm1, %v1608_v7  ;;  %1447 = vmatprep.subr.bf16.mxu1 %v1558_v0  ;;  %v926_v54 = vsel %vm570_vm4, %v919_v42, %v921_v44 }
  0x9f   : > { %v933_v59 = vsel %vm193_vm1, %v926_v54, 0 }
  0xa1   : > { %v923_v47 = vpop.permute.xlu0 %922  ;;  %v925_v53 = vpop.permute.xlu1 %924 }
  0xa2   : > { %v927_v52 = vsel %vm570_vm4, %v921_v44, %v923_v47  ;;  %v928_v55 = vsel %vm570_vm4, %v923_v47, %v925_v53 }
  0xa3   : > { %1354 = vmatmul.mubr.msk.bf16.vlgmr.msra.gmra.mrb[8].mxu0 %vm189_vm2, %v1348_v38  ;;  %1444 = vmatmul.mubr.msk.bf16.vlgmr.msra.gmra.mrb[8].mxu1 %vm189_vm2, %v1348_v38  ;;  %v939_v60 = vsel %vm193_vm1, %v928_v55, 0 }
  0xa4   : > { %695 = vmatpush1.bf16.msra.mxu0 %v1613_v9  ;;  %1448 = vmatpush3.bf16.msra.mxu1 %v692_v40 }
  0xa5   : > { %726 = vmatprep.mubr.bf16.mxu0 %v1559_v1  ;;  %1449 = vmatprep.mubr.msk.bf16.mxu1 %vm1560_vm0, %v1558_v0  ;;  %v1028_v51 = vpop.permute.xlu0 %1027  ;;  %v1030_v57 = vpop.permute.xlu1 %1029 }
  0xa6   : > { %1372 = vmatprep.subr.msk.bf16.mxu0 %vm193_vm1, %v818_v41  ;;  %1453 = vmatprep.subr.bf16.mxu1 %v1558_v0  ;;  %v1035_v63 = vsel %vm324_vm3, %v1028_v51, %v1030_v57 }
  0xa7   : > { %v1042_v4 = vsel %vm193_vm1, %v1035_v63, 0 }
  0xa9   : > { %v1032_v58 = vpop.permute.xlu0 %1031  ;;  %v1034_v62 = vpop.permute.xlu1 %1033 }
  0xaa   : > { %v1036_v61 = vsel %vm324_vm3, %v1030_v57, %v1032_v58  ;;  %v1037_v2 = vsel %vm324_vm3, %v1032_v58, %v1034_v62 }
  0xab   : > { %v1048_v5 = vsel %vm193_vm1, %v1037_v2, 0 }
  0xaf   : > { %1361 = vmatmul.mubr.msk.bf16.vlgmr.msra.gmra.mrb[8].mxu0 %vm189_vm2, %v1356_v48  ;;  %1450 = vmatmul.mubr.msk.bf16.vlgmr.msra.gmra.mrb[8].mxu1 %vm189_vm2, %v1356_v48 }
  0xb0   : > { %833 = vmatpush1.bf16.msra.mxu0 %v824_v49  ;;  %1454 = vmatpush3.bf16.msra.mxu1 %v830_v50 }
  0xb1   : > { %864 = vmatprep.mubr.bf16.mxu0 %v1559_v1  ;;  %1455 = vmatprep.mubr.msk.bf16.mxu1 %vm1560_vm0, %v1558_v0 }
  0xb2   : > { %1376 = vmatprep.subr.msk.bf16.mxu0 %vm193_vm1, %v927_v52  ;;  %1459 = vmatprep.subr.bf16.mxu1 %v1558_v0 }
  0xb7   : > { %1373 = vmatmul.mubr.msk.bf16.vlgmr.msra.gmra.mrb[12].mxu0 %vm189_vm2, %v1367_v56  ;;  %1456 = vmatmul.mubr.msk.bf16.vlgmr.msra.gmra.mrb[12].mxu1 %vm189_vm2, %v1367_v56 }
  0xb8   : > { %942 = vmatpush1.bf16.msra.mxu0 %v933_v59  ;;  %1460 = vmatpush3.bf16.msra.mxu1 %v939_v60 }
  0xb9   : > { %973 = vmatprep.mubr.bf16.mxu0 %v1559_v1  ;;  %1461 = vmatprep.mubr.msk.bf16.mxu1 %vm1560_vm0, %v1558_v0 }
  0xba   : > { %1380 = vmatprep.subr.msk.bf16.mxu0 %vm193_vm1, %v1036_v61  ;;  %1465 = vmatprep.subr.bf16.mxu1 %v1558_v0  ;;  %v176_v11 = vpop.permute.xlu0 %175 }
  0xc3   : > { %1377 = vmatmul.mubr.msk.bf16.vlgmr.msra.gmra.mrb[12].mxu0 %vm189_vm2, %v1375_v3  ;;  %1462 = vmatmul.mubr.msk.bf16.vlgmr.msra.gmra.mrb[12].mxu1 %vm189_vm2, %v1375_v3 }
  0xc4   : > { %1051 = vmatpush1.bf16.msra.mxu0 %v1042_v4  ;;  %1466 = vmatpush3.bf16.msra.mxu1 %v1048_v5 }
  0xc5   : > { %1082 = vmatprep.mubr.bf16.mxu0 %v1559_v1  ;;  %1467 = vmatprep.mubr.msk.bf16.mxu1 %vm1560_vm0, %v1558_v0 }
  0xc6   : > { %1387 = vmatprep.subr.msk.bf16.mxu0 %vm193_vm1, %v1608_v7  ;;  %1471 = vmatprep.subr.bf16.mxu1 %v1558_v0  ;;  %v1383_v7 = vld [vmem:[%s1773_s1 + $0x20] sm:$0xf] }
  0xcf   : > { %1381 = vmatmul.mubr.msk.bf16.vlgmr.msra.gmra.mrb[12].mxu0 %vm189_vm2, %v1379_v8  ;;  %1468 = vmatmul.mubr.msk.bf16.vlgmr.msra.gmra.mrb[12].mxu1 %vm189_vm2, %v1379_v8 }
  0xd0   : > { %1159 = vmatpush1.bf16.msra.mxu0 %v1613_v9  ;;  %1472 = vmatpush3.bf16.msra.mxu1 %v1156_v10 }
  0xd1   : > { %1190 = vmatprep.mubr.bf16.mxu0 %v1559_v1  ;;  %1473 = vmatprep.mubr.msk.bf16.mxu1 %vm1560_vm0, %v1558_v0 }
  0xdb   : > { %1388 = vmatmul.mubr.msk.bf16.vlgmr.msra.gmra.mrb[12].mxu0 %vm189_vm2, %v1383_v7  ;;  %1474 = vmatmul.mubr.msk.bf16.vlgmr.msra.gmra.mrb[12].mxu1 %vm189_vm2, %v1383_v7 }
  0xeb   : > { %v237_v12 = vpop.f32.mrb[0].mxu0  ;;  %v278_v13 = vpop.f32.mrb[0].mxu1 }
  0xec   : > { %v239_v14 = vpop.f32.mrb[1].mxu0  ;;  %v1427_v9 = vpop.f32.mrb[1].mxu1  ;;  %v284_v15 = vadd.f32 %v237_v12, %v176_v11  ;;  %v286_v16 = vadd.f32 %v278_v13, %v176_v11 }
  0xed   : > { %v241_v1 = vpop.f32.mrb[2].mxu0  ;;  %v285_v17 = vadd.f32 %v239_v14, %v176_v11  ;;  %v281_v18 = vpop.f32.mrb[2].mxu1 }
  0xee   : > { %v1398_v0 = vpack.c.bf16 %v286_v16, %v286_v16  ;;  %v242_v19 = vpop.f32.mrb[3].mxu0  ;;  %v1428_v20 = vpop.f32.mrb[3].mxu1 }
  0xef   : > { %v1397_v21 = vpack.c.bf16 %v285_v17, %v284_v15 }
  0xf0   : > { %301 = vst [vmem:[%s1759_s19 + $0x8] sm:$0xf] %v1398_v0 }
  0xf1   : > { %300 = vst [vmem:[%s1759_s19] sm:$0xff] %v1397_v21 }
 0x16e   : > { %v482_v22 = vpop.f32.mrb[4].mxu0  ;;  %v523_v23 = vpop.f32.mrb[4].mxu1 }
 0x16f   : > { %v1477_v24 = vadd.f32 %v482_v22, %v176_v11  ;;  %v1479_v25 = vadd.f32 %v523_v23, %v176_v11  ;;  %v484_v26 = vpop.f32.mrb[5].mxu0  ;;  %v1439_v27 = vpop.f32.mrb[5].mxu1 }
 0x170   : > { %v1478_v28 = vadd.f32 %v484_v26, %v176_v11  ;;  %v486_v29 = vpop.f32.mrb[6].mxu0  ;;  %v526_v30 = vpop.f32.mrb[6].mxu1 }
 0x171   : > { %v1400_v31 = vpack.c.bf16 %v1479_v25, %v1479_v25  ;;  %v487_v32 = vpop.f32.mrb[7].mxu0  ;;  %v1440_v33 = vpop.f32.mrb[7].mxu1 }
 0x172   : > { %v1399_v34 = vpack.c.bf16 %v1478_v28, %v1477_v24 }
 0x173   : > { %1347 = vst [vmem:[%s1759_s19 + $0x14] sm:$0xf] %v1400_v31 }
 0x174   : > { %1346 = vst [vmem:[%s1759_s19 + $0xc] sm:$0xff] %v1399_v34 }
 0x182   : > { %v728_v35 = vpop.f32.mrb[8].mxu0  ;;  %v769_v36 = vpop.f32.mrb[8].mxu1 }
 0x183   : > { %v1480_v37 = vadd.f32 %v728_v35, %v176_v11  ;;  %v1482_v38 = vadd.f32 %v769_v36, %v176_v11  ;;  %v730_v39 = vpop.f32.mrb[9].mxu0  ;;  %v1451_v40 = vpop.f32.mrb[9].mxu1 }
 0x184   : > { %v1481_v41 = vadd.f32 %v730_v39, %v176_v11  ;;  %v732_v42 = vpop.f32.mrb[10].mxu0  ;;  %v772_v43 = vpop.f32.mrb[10].mxu1 }
 0x185   : > { %v1402_v44 = vpack.c.bf16 %v1482_v38, %v1482_v38  ;;  %v733_v45 = vpop.f32.mrb[11].mxu0  ;;  %v1452_v46 = vpop.f32.mrb[11].mxu1 }
 0x186   : > { %v1401_v47 = vpack.c.bf16 %v1481_v41, %v1480_v37 }
 0x187   : > { %1366 = vst [vmem:[%s1759_s19 + $0x20] sm:$0xf] %v1402_v44 }
 0x188   : > { %1365 = vst [vmem:[%s1759_s19 + $0x18] sm:$0xff] %v1401_v47 }
 0x1ae   : > { %v1192_v48 = vpop.f32.mrb[12].mxu0  ;;  %v1233_v49 = vpop.f32.mrb[12].mxu1 }
 0x1af   : > { %v1483_v50 = vadd.f32 %v1192_v48, %v176_v11  ;;  %v1485_v51 = vadd.f32 %v1233_v49, %v176_v11  ;;  %v1194_v52 = vpop.f32.mrb[13].mxu0  ;;  %v1475_v53 = vpop.f32.mrb[13].mxu1 }
 0x1b0   : > { %v1484_v54 = vadd.f32 %v1194_v52, %v176_v11  ;;  %v1196_v55 = vpop.f32.mrb[14].mxu0  ;;  %v1236_v56 = vpop.f32.mrb[14].mxu1 }
 0x1b1   : > { %v1404_v57 = vpack.c.bf16 %v1485_v51, %v1485_v51  ;;  %v1197_v58 = vpop.f32.mrb[15].mxu0  ;;  %v1476_v59 = vpop.f32.mrb[15].mxu1 }
 0x1b2   : > { %v1403_v60 = vpack.c.bf16 %v1484_v54, %v1483_v50 }
 0x1b3   : > { %1393 = vst [vmem:[%s1759_s19 + $0x2c] sm:$0xf] %v1404_v57 }
 0x1b4   : > { %1392 = vst [vmem:[%s1759_s19 + $0x24] sm:$0xff] %v1403_v60 }
 0x1b5 PF: > { %s13_s12 = sadd.s32 1, %s1556_s12  }
 0x1b6   : > { %p10_p4 = scmp.ge.s32.totalorder %s13_s12, 4  }
 0x1b8   :  { %12 = sbr.rel (!%p10_p4) target bundleno = 1 (0x1), region = 73 }

</bundles_post_ra>
